<compile_context>
chip_gen: v7x
topology: tpu7x:2x2x1
jax: 0.10.0
libtpu: 0.0.40
codegen_flags: <defaults>
</compile_context>

<pallas_src>
import jax
import jax.numpy as jnp
from jax import lax
from jax.experimental import pallas as pl
from jax.experimental.pallas import tpu as pltpu


# ----------------------------------------------------------------------------
# The single fused Pallas kernel: the entire ShortUNet forward on one row block.
# ----------------------------------------------------------------------------
def _short_unet_kernel(x_ref, w1_ref, w2_ref, w3_ref, w4a_ref, w4b_ref,
                       w5a_ref, w5b_ref, w6_ref,
                       s1_ref, s2_ref, s3_ref, s4_ref, s5_ref, b6_ref,
                       o_ref):
    """Every conv layer = bf16 MXU matmul (BN scale pre-folded into columns) + f32 shift + ReLU.
    Concats are split matmuls (wXa/wXb); depth_to_space is handled by block-diagonal weights."""

    def mm(a, w_ref):
        return jnp.dot(a.astype(jnp.bfloat16), w_ref[...],
                       preferred_element_type=jnp.float32)

    x = x_ref[...]
    h1 = jnp.maximum(mm(x, w1_ref) + s1_ref[...], 0.0)                      # inc (folded) + down1
    h2 = jnp.maximum(mm(h1, w2_ref) + s2_ref[...], 0.0)                     # down2
    h3 = jnp.maximum(mm(h2, w3_ref) + s3_ref[...], 0.0)                     # resizeconv (1x1)
    h4 = jnp.maximum(mm(h3, w4a_ref) + mm(h2, w4b_ref) + s4_ref[...], 0.0)  # up1(cat[x, x2])
    h5 = jnp.maximum(mm(h4, w5a_ref) + mm(h1, w5b_ref) + s5_ref[...], 0.0)  # up2(cat[x, x1])
    o_ref[...] = (mm(h5, w6_ref) + b6_ref[...]).astype(o_ref.dtype)         # outc (no ReLU)


# ----------------------------------------------------------------------------
# Trace-time weight composition (tiny arrays, done once; nothing here runs per pixel).
# ----------------------------------------------------------------------------
def bn_affine(gamma, beta, mean, var, eps=1e-5):
    scale = gamma / jnp.sqrt(var + eps)
    shift = beta - mean * scale
    return scale, shift


def _block_diag(a, nblk):
    ci, co = a.shape
    z = jnp.zeros((nblk, ci, nblk, co), a.dtype)
    for k in range(nblk):
        z = z.at[k, :, k, :].set(a)
    return z.reshape(nblk * ci, nblk * co)


def compose_weights(params, resizes):
    """Build the matmul weights/shifts used by the fused kernel (patch-grouped layout)."""
    r0, r1, _ = resizes
    hi = lax.Precision.HIGHEST  # trace-time only; keeps the folding itself exact

    s1, t1 = bn_affine(*params["d1_bn"])
    s2, t2 = bn_affine(*params["d2_bn"])
    s3, t3 = bn_affine(*params["rc_bn"])
    s4, t4 = bn_affine(*params["u1_bn"])
    s5, t5 = bn_affine(*params["u2_bn"])

    # --- inc (1x1, with bias) folded into down1 (k=s=r0, no bias) ---
    inc_w = params["inc_w"]                                  # (h0, cin, 1, 1)
    h0, cin = inc_w.shape[0], inc_w.shape[1]
    Winc = inc_w.reshape(h0, cin).T                          # (cin, h0)
    binc = params["inc_b"]                                   # (h0,)

    d1_w = params["d1_w"]                                    # (h1, h0, r0, r0)
    h1c = d1_w.shape[0]
    Wd1 = d1_w.transpose(2, 3, 1, 0)                         # (di, dj, h0, h1)
    Wc = jnp.einsum("cm,ijmo->ijco", Winc, Wd1, precision=hi)   # (di, dj, cin, h1)
    b1 = jnp.einsum("m,ijmo->o", binc, Wd1, precision=hi)       # (h1,)

    # W1: (R*R*cin, r1*r1*h1) — maps a whole RxR input patch to all r1xr1 down1 pixels of a cell.
    R = r0 * r1
    W1 = jnp.zeros((R, R, cin, r1, r1, h1c), jnp.float32)
    for u in range(r1):
        for v in range(r1):
            for di in range(r0):
                for dj in range(r0):
                    W1 = W1.at[r0 * u + di, r0 * v + dj, :, u, v, :].set(Wc[di, dj])
    W1 = W1.reshape(R * R * cin, r1 * r1 * h1c)
    W1 = W1 * jnp.tile(s1, r1 * r1)[None, :]
    sh1 = jnp.tile(s1 * b1 + t1, r1 * r1)

    # --- down2 (k=s=r1, no bias): its space_to_depth input is exactly h1's column layout ---
    d2_w = params["d2_w"]                                    # (h2, h1, r1, r1)
    h2c = d2_w.shape[0]
    W2 = d2_w.transpose(2, 3, 1, 0).reshape(r1 * r1 * h1c, h2c) * s2[None, :]
    sh2 = t2

    # --- resizeconv (resizes[-1] == 1 -> DownConv with a 1x1 conv, no bias) ---
    rc_w = params["rc_w"]                                    # (h2, h2, 1, 1)
    W3 = rc_w.reshape(h2c, h2c).T * s3[None, :]
    sh3 = t3

    # --- up1 = ConvTranspose(k=s=r1) on cat([resizeconv_out, x2]) -> split matmuls ---
    u1_w = params["u1_w"]                                    # (2*h2, h1, r1, r1)
    Wu1 = u1_w.transpose(0, 2, 3, 1).reshape(2 * h2c, r1 * r1 * h1c)
    Wu1 = Wu1 * jnp.tile(s4, r1 * r1)[None, :]
    W4a, W4b = Wu1[:h2c], Wu1[h2c:]
    sh4 = jnp.tile(t4, r1 * r1)

    # --- up2 = ConvTranspose(k=s=r0) on cat([up1_out, x1]); block-diag over the r1*r1 sub-pixels ---
    u2_w = params["u2_w"]                                    # (2*h1, h0, r0, r0)
    Wu2 = u2_w.transpose(0, 2, 3, 1).reshape(2 * h1c, r0 * r0 * h0)
    Wu2 = Wu2 * jnp.tile(s5, r0 * r0)[None, :]
    W5a = _block_diag(Wu2[:h1c], r1 * r1)
    W5b = _block_diag(Wu2[h1c:], r1 * r1)
    sh5 = jnp.tile(t5, r1 * r1 * r0 * r0)

    # --- outc (1x1, with bias): block-diag over all R*R output pixels of a cell ---
    outc_w = params["outc_w"]                                # (cout, h0, 1, 1)
    cout = outc_w.shape[0]
    W6 = _block_diag(outc_w.reshape(cout, h0).T, r1 * r1 * r0 * r0)
    b6 = jnp.tile(params["outc_b"], r1 * r1 * r0 * r0)

    bf = lambda w: w.astype(jnp.bfloat16)
    row = lambda v: v.reshape(1, -1).astype(jnp.float32)
    return dict(w1=bf(W1), w2=bf(W2), w3=bf(W3), w4a=bf(W4a), w4b=bf(W4b),
                w5a=bf(W5a), w5b=bf(W5b), w6=bf(W6),
                s1=row(sh1), s2=row(sh2), s3=row(sh3), s4=row(sh4), s5=row(sh5), b6=row(b6))


# ----------------------------------------------------------------------------
# Fused forward: one pallas_call for the whole network.
# ----------------------------------------------------------------------------
def short_unet_fused_forward(cw, x_nchw, resizes):
    r0, r1, r2 = resizes
    # TODO(synk): the fused single-kernel path assumes resizes == [r0, r1, 1] (bottleneck keeps the
    # spatial size, so the skip nearest-resizes are identities); other bottleneck resizes would
    # need an extra in-kernel regroup (handled only by the pure-JAX reference here).
    assert r2 == 1, "fused path is specialized to resizes[-1] == 1"
    n, cin, H, W = x_nchw.shape
    R = r0 * r1
    assert H % R == 0 and W % R == 0, (H, W, R)

    # NCHW -> NHWC -> grouped rows: one row per (n, H/R, W/R) cell, cols = (a, b, cin) of the RxR
    # patch.  This is both encoder space_to_depth steps pre-composed onto the network input.
    x = jnp.transpose(x_nchw, (0, 2, 3, 1)).astype(jnp.float32)
    Hc, Wc = H // R, W // R
    xg = x.reshape(n, Hc, R, Wc, R, cin).transpose(0, 1, 3, 2, 4, 5)
    xg = xg.reshape(n * Hc * Wc, R * R * cin).astype(jnp.bfloat16)

    M, K = xg.shape
    # 2-way row split (batch halves) so v7x's two TensorCores both get work; on v5e/v6e it is just
    # two cheap sequential steps.  Weights use constant index_maps -> DMA'd once, stay in VMEM.
    nsteps = 2 if M % 32 == 0 else 1
    tm = M // nsteps

    weights = [cw["w1"], cw["w2"], cw["w3"], cw["w4a"], cw["w4b"], cw["w5a"], cw["w5b"], cw["w6"]]
    shifts = [cw["s1"], cw["s2"], cw["s3"], cw["s4"], cw["s5"], cw["b6"]]
    n_out = cw["w6"].shape[1]

    out2d = pl.pallas_call(
        _short_unet_kernel,
        out_shape=jax.ShapeDtypeStruct((M, n_out), jnp.float32),
        grid_spec=pltpu.PrefetchScalarGridSpec(
            num_scalar_prefetch=0,
            grid=(nsteps,),
            in_specs=(
                [pl.BlockSpec((tm, K), lambda i: (i, 0))]
                + [pl.BlockSpec(w.shape, lambda i: (0, 0)) for w in weights]
                + [pl.BlockSpec(s.shape, lambda i: (0, 0)) for s in shifts]
            ),
            out_specs=pl.BlockSpec((tm, n_out), lambda i: (i, 0)),
        ),
        compiler_params=pltpu.CompilerParams(
            dimension_semantics=("parallel",),
            vmem_limit_bytes=32 * 1024 * 1024,  # everything here is ~1 MiB; explicit for v7x safety
        ),
    )(xg, *weights, *shifts)

    cout = n_out // (R * R)
    # Un-group: rows (n, P, Q), cols (u, v, p, q, c)  ->  h = R*P + r0*u + p, w = R*Q + r0*v + q.
    y = out2d.reshape(n, Hc, Wc, r1, r1, r0, r0, cout)
    y = y.transpose(0, 1, 3, 5, 2, 4, 6, 7).reshape(n, H, W, cout)
    return jnp.transpose(y, (0, 3, 1, 2))                    # NHWC -> NCHW


# ----------------------------------------------------------------------------
# Pure-JAX layer-by-layer reference (faithful to the PyTorch module, f32/HIGHEST).
# ----------------------------------------------------------------------------
def space_to_depth(x, r):
    n, h, w, c = x.shape
    x = x.reshape(n, h // r, r, w // r, r, c).transpose(0, 1, 3, 2, 4, 5)
    return x.reshape(n, h // r, w // r, r * r * c)


def depth_to_space(x, r, c_out):
    n, h, w, _ = x.shape
    x = x.reshape(n, h, w, r, r, c_out).transpose(0, 1, 3, 2, 4, 5)
    return x.reshape(n, h * r, w * r, c_out)


def nearest_resize(x, oh, ow):
    n, h, w, c = x.shape
    if (h, w) == (oh, ow):
        return x
    hi = (jnp.arange(oh) * h) // oh
    wi = (jnp.arange(ow) * w) // ow
    return x[:, hi][:, :, wi]


def _mm_ref(x2d, w, scale, shift, relu):
    y = jnp.dot(x2d, w, precision=lax.Precision.HIGHEST)
    y = y * scale[None, :] + shift[None, :]
    return jnp.maximum(y, 0.0) if relu else y


def _conv1x1_ref(x, w, b):
    n, h, wd, ci = x.shape
    co = w.shape[0]
    y = _mm_ref(x.reshape(-1, ci), w.reshape(co, ci).T, jnp.ones((co,), jnp.float32), b, False)
    return y.reshape(n, h, wd, co)


def _down_ref(x, w, bn, r):
    co, ci = w.shape[0], w.shape[1]
    n, h, wd, _ = x.shape
    xp = space_to_depth(x, r)
    wm = w.transpose(2, 3, 1, 0).reshape(r * r * ci, co)
    scale, shift = bn_affine(*bn)
    y = _mm_ref(xp.reshape(-1, r * r * ci), wm, scale, shift, True)
    return y.reshape(n, h // r, wd // r, co)


def _up_ref(x, w, bn, r):
    ci, co = w.shape[0], w.shape[1]
    n, h, wd, _ = x.shape
    wm = w.transpose(0, 2, 3, 1).reshape(ci, r * r * co)
    scale, shift = bn_affine(*bn)
    y = _mm_ref(x.reshape(-1, ci), wm, jnp.tile(scale, r * r), jnp.tile(shift, r * r), True)
    return depth_to_space(y.reshape(n, h, wd, r * r * co), r, co)


def short_unet_reference(params, x_nchw, resizes):
    r0, r1, r2 = resizes
    x = jnp.transpose(x_nchw, (0, 2, 3, 1)).astype(jnp.float32)
    x = _conv1x1_ref(x, params["inc_w"], params["inc_b"])
    x1 = _down_ref(x, params["d1_w"], params["d1_bn"], r0)
    x2 = _down_ref(x1, params["d2_w"], params["d2_bn"], r1)
    if r2 < 1:
        x = _up_ref(x2, params["rc_w"], params["rc_bn"], int(1.0 / r2))
    else:
        x = _down_ref(x2, params["rc_w"], params["rc_bn"], int(r2))
    x2r = nearest_resize(x2, x.shape[1], x.shape[2])
    x = _up_ref(jnp.concatenate([x, x2r], axis=-1), params["u1_w"], params["u1_bn"], r1)
    x1r = nearest_resize(x1, x.shape[1], x.shape[2])
    x = _up_ref(jnp.concatenate([x, x1r], axis=-1), params["u2_w"], params["u2_bn"], r0)
    x = _conv1x1_ref(x, params["outc_w"], params["outc_b"])
    return jnp.transpose(x, (0, 3, 1, 2))


# ----------------------------------------------------------------------------
# Deterministic synthetic parameters (shapes from ShortUNet.__init__)
# ----------------------------------------------------------------------------
def _conv_w(key, co, ci, k):
    fan_in = ci * k * k
    return jax.random.normal(key, (co, ci, k, k), jnp.float32) / jnp.sqrt(fan_in)


def _convT_w(key, ci, co, k):
    fan_in = ci * k * k
    return jax.random.normal(key, (ci, co, k, k), jnp.float32) / jnp.sqrt(fan_in)


def _bn(key, c):
    k1, k2, k3, k4 = jax.random.split(key, 4)
    gamma = 1.0 + 0.05 * jax.random.normal(k1, (c,), jnp.float32)
    beta = 0.05 * jax.random.normal(k2, (c,), jnp.float32)
    mean = 0.1 * jax.random.normal(k3, (c,), jnp.float32)
    var = 1.0 + 0.1 * jax.random.uniform(k4, (c,), jnp.float32)
    return (gamma, beta, mean, var)


def init_params(key, in_channels, out_channels, h, resizes):
    r0, r1, r2 = resizes
    rlast = int(1.0 / r2) if r2 < 1 else int(r2)
    ks = jax.random.split(key, 12)
    params = {
        "inc_w": _conv_w(ks[0], h[0], in_channels, 1),
        "inc_b": 0.1 * jax.random.normal(ks[1], (h[0],), jnp.float32),
        "d1_w": _conv_w(ks[2], h[1], h[0], r0),
        "d1_bn": _bn(ks[3], h[1]),
        "d2_w": _conv_w(ks[4], h[2], h[1], r1),
        "d2_bn": _bn(ks[5], h[2]),
        "rc_bn": _bn(ks[7], h[2]),
        "u1_w": _convT_w(ks[8], 2 * h[2], h[1], r1),
        "u1_bn": _bn(ks[9], h[1]),
        "u2_w": _convT_w(ks[10], 2 * h[1], h[0], r0),
        "u2_bn": _bn(ks[11], h[0]),
    }
    if r2 < 1:
        params["rc_w"] = _convT_w(ks[6], h[2], h[2], rlast)   # UpConv
    else:
        params["rc_w"] = _conv_w(ks[6], h[2], h[2], rlast)    # DownConv
    k_out = jax.random.split(ks[0], 2)
    params["outc_w"] = _conv_w(k_out[0], out_channels, h[0], 1)
    params["outc_b"] = 0.1 * jax.random.normal(k_out[1], (out_channels,), jnp.float32)
    return params


# ----------------------------------------------------------------------------
if __name__ == "__main__":
    key = jax.random.PRNGKey(0)
    k_param, k_x = jax.random.split(key)

    in_channels, out_channels = 4, 4
    h_channels = [32, 32, 32]
    resizes = [2, 2, 1]                     # down1/down2 stride-2, 1x1 bottleneck resizeconv
    N, H, W = 2, 16, 16

    params = init_params(k_param, in_channels, out_channels, h_channels, resizes)
    x = jax.random.normal(k_x, (N, in_channels, H, W), jnp.float32)   # NCHW, like PyTorch

    cw = compose_weights(params, resizes)   # one-time weight folding (trace-time / load-time cost)
    fwd = jax.jit(lambda cw_, x_: short_unet_fused_forward(cw_, x_, resizes))
    out = jax.block_until_ready(fwd(cw, x))
    assert out.shape == (N, out_channels, H, W), out.shape

    # Semantics check: fused single-kernel path (bf16 MXU inputs, f32 accumulation) vs the faithful
    # layer-by-layer f32/HIGHEST reference.  Differences are at the accumulated-bf16 rounding level.
    ref = jax.block_until_ready(short_unet_reference(params, x, resizes))
    assert jnp.allclose(out, ref, rtol=5e-2, atol=5e-2), float(jnp.max(jnp.abs(out - ref)))

    print("KERNEL_OK")
</pallas_src>

<mosaic_0001>
module attributes {stable_mosaic.version = 11 : i64} {
  func.func @_short_unet_kernel(%arg0: i32, %arg1: memref<16x64xbf16, #tpu.memory_space<vmem>>, %arg2: memref<64x128xbf16, #tpu.memory_space<vmem>>, %arg3: memref<128x32xbf16, #tpu.memory_space<vmem>>, %arg4: memref<32x32xbf16, #tpu.memory_space<vmem>>, %arg5: memref<32x128xbf16, #tpu.memory_space<vmem>>, %arg6: memref<32x128xbf16, #tpu.memory_space<vmem>>, %arg7: memref<128x512xbf16, #tpu.memory_space<vmem>>, %arg8: memref<128x512xbf16, #tpu.memory_space<vmem>>, %arg9: memref<512x64xbf16, #tpu.memory_space<vmem>>, %arg10: memref<1x128xf32, #tpu.memory_space<vmem>>, %arg11: memref<1x32xf32, #tpu.memory_space<vmem>>, %arg12: memref<1x32xf32, #tpu.memory_space<vmem>>, %arg13: memref<1x128xf32, #tpu.memory_space<vmem>>, %arg14: memref<1x512xf32, #tpu.memory_space<vmem>>, %arg15: memref<1x64xf32, #tpu.memory_space<vmem>>, %arg16: memref<16x64xf32, #tpu.memory_space<vmem>>) attributes {dimension_semantics = [#tpu.dimension_semantics<parallel>], iteration_bounds = array<i64: 2>, scalar_prefetch = 0 : i64, scratch_operands = 0 : i64, tpu.core_type = #tpu.core_type<tc>, window_params = [{transform_indices = @transform_0, window_bounds = array<i64: 16, 64>}, {pipeline_mode = #tpu.pipeline_mode<synchronous>, transform_indices = @transform_1, window_bounds = array<i64: 64, 128>}, {pipeline_mode = #tpu.pipeline_mode<synchronous>, transform_indices = @transform_2, window_bounds = array<i64: 128, 32>}, {pipeline_mode = #tpu.pipeline_mode<synchronous>, transform_indices = @transform_3, window_bounds = array<i64: 32, 32>}, {pipeline_mode = #tpu.pipeline_mode<synchronous>, transform_indices = @transform_4, window_bounds = array<i64: 32, 128>}, {pipeline_mode = #tpu.pipeline_mode<synchronous>, transform_indices = @transform_5, window_bounds = array<i64: 32, 128>}, {pipeline_mode = #tpu.pipeline_mode<synchronous>, transform_indices = @transform_6, window_bounds = array<i64: 128, 512>}, {pipeline_mode = #tpu.pipeline_mode<synchronous>, transform_indices = @transform_7, window_bounds = array<i64: 128, 512>}, {pipeline_mode = #tpu.pipeline_mode<synchronous>, transform_indices = @transform_8, window_bounds = array<i64: 512, 64>}, {pipeline_mode = #tpu.pipeline_mode<synchronous>, transform_indices = @transform_9, window_bounds = array<i64: 1, 128>}, {pipeline_mode = #tpu.pipeline_mode<synchronous>, transform_indices = @transform_10, window_bounds = array<i64: 1, 32>}, {pipeline_mode = #tpu.pipeline_mode<synchronous>, transform_indices = @transform_11, window_bounds = array<i64: 1, 32>}, {pipeline_mode = #tpu.pipeline_mode<synchronous>, transform_indices = @transform_12, window_bounds = array<i64: 1, 128>}, {pipeline_mode = #tpu.pipeline_mode<synchronous>, transform_indices = @transform_13, window_bounds = array<i64: 1, 512>}, {pipeline_mode = #tpu.pipeline_mode<synchronous>, transform_indices = @transform_14, window_bounds = array<i64: 1, 64>}, {transform_indices = @transform_15, window_bounds = array<i64: 16, 64>}]} {
    %c0 = arith.constant 0 : index
    %c0_0 = arith.constant 0 : index
    %0 = vector.load %arg1[%c0, %c0_0] : memref<16x64xbf16, #tpu.memory_space<vmem>>, vector<16x64xbf16>
    %c0_1 = arith.constant 0 : index
    %c0_2 = arith.constant 0 : index
    %1 = vector.load %arg2[%c0_1, %c0_2] : memref<64x128xbf16, #tpu.memory_space<vmem>>, vector<64x128xbf16>
    %cst = arith.constant dense<0.000000e+00> : vector<16x128xf32>
    %2 = tpu.matmul %0, %1, %cst {dimension_numbers = #tpu.dot_dimension_numbers<[1], [0], [0], [1], [0, 0, 1, 1], [], []>} : vector<16x64xbf16>, vector<64x128xbf16>, vector<16x128xf32> -> vector<16x128xf32>
    %c0_3 = arith.constant 0 : index
    %c0_4 = arith.constant 0 : index
    %3 = vector.load %arg10[%c0_3, %c0_4] : memref<1x128xf32, #tpu.memory_space<vmem>>, vector<1x128xf32>
    %4 = vector.broadcast %3 : vector<1x128xf32> to vector<16x128xf32>
    %5 = arith.addf %2, %4 : vector<16x128xf32>
    %cst_5 = arith.constant 0.000000e+00 : f32
    %6 = vector.broadcast %cst_5 : f32 to vector<16x128xf32>
    %7 = arith.maximumf %5, %6 : vector<16x128xf32>
    %8 = arith.truncf %7 : vector<16x128xf32> to vector<16x128xbf16>
    %c0_6 = arith.constant 0 : index
    %c0_7 = arith.constant 0 : index
    %9 = vector.load %arg3[%c0_6, %c0_7] : memref<128x32xbf16, #tpu.memory_space<vmem>>, vector<128x32xbf16>
    %cst_8 = arith.constant dense<0.000000e+00> : vector<16x32xf32>
    %10 = tpu.matmul %8, %9, %cst_8 {dimension_numbers = #tpu.dot_dimension_numbers<[1], [0], [0], [1], [0, 0, 1, 1], [], []>} : vector<16x128xbf16>, vector<128x32xbf16>, vector<16x32xf32> -> vector<16x32xf32>
    %c0_9 = arith.constant 0 : index
    %c0_10 = arith.constant 0 : index
    %11 = vector.load %arg11[%c0_9, %c0_10] : memref<1x32xf32, #tpu.memory_space<vmem>>, vector<1x32xf32>
    %12 = vector.broadcast %11 : vector<1x32xf32> to vector<16x32xf32>
    %13 = arith.addf %10, %12 : vector<16x32xf32>
    %cst_11 = arith.constant 0.000000e+00 : f32
    %14 = vector.broadcast %cst_11 : f32 to vector<16x32xf32>
    %15 = arith.maximumf %13, %14 : vector<16x32xf32>
    %16 = arith.truncf %15 : vector<16x32xf32> to vector<16x32xbf16>
    %c0_12 = arith.constant 0 : index
    %c0_13 = arith.constant 0 : index
    %17 = vector.load %arg4[%c0_12, %c0_13] : memref<32x32xbf16, #tpu.memory_space<vmem>>, vector<32x32xbf16>
    %cst_14 = arith.constant dense<0.000000e+00> : vector<16x32xf32>
    %18 = tpu.matmul %16, %17, %cst_14 {dimension_numbers = #tpu.dot_dimension_numbers<[1], [0], [0], [1], [0, 0, 1, 1], [], []>} : vector<16x32xbf16>, vector<32x32xbf16>, vector<16x32xf32> -> vector<16x32xf32>
    %c0_15 = arith.constant 0 : index
    %c0_16 = arith.constant 0 : index
    %19 = vector.load %arg12[%c0_15, %c0_16] : memref<1x32xf32, #tpu.memory_space<vmem>>, vector<1x32xf32>
    %20 = vector.broadcast %19 : vector<1x32xf32> to vector<16x32xf32>
    %21 = arith.addf %18, %20 : vector<16x32xf32>
    %cst_17 = arith.constant 0.000000e+00 : f32
    %22 = vector.broadcast %cst_17 : f32 to vector<16x32xf32>
    %23 = arith.maximumf %21, %22 : vector<16x32xf32>
    %24 = arith.truncf %23 : vector<16x32xf32> to vector<16x32xbf16>
    %c0_18 = arith.constant 0 : index
    %c0_19 = arith.constant 0 : index
    %25 = vector.load %arg5[%c0_18, %c0_19] : memref<32x128xbf16, #tpu.memory_space<vmem>>, vector<32x128xbf16>
    %cst_20 = arith.constant dense<0.000000e+00> : vector<16x128xf32>
    %26 = tpu.matmul %24, %25, %cst_20 {dimension_numbers = #tpu.dot_dimension_numbers<[1], [0], [0], [1], [0, 0, 1, 1], [], []>} : vector<16x32xbf16>, vector<32x128xbf16>, vector<16x128xf32> -> vector<16x128xf32>
    %27 = arith.truncf %15 : vector<16x32xf32> to vector<16x32xbf16>
    %c0_21 = arith.constant 0 : index
    %c0_22 = arith.constant 0 : index
    %28 = vector.load %arg6[%c0_21, %c0_22] : memref<32x128xbf16, #tpu.memory_space<vmem>>, vector<32x128xbf16>
    %cst_23 = arith.constant dense<0.000000e+00> : vector<16x128xf32>
    %29 = tpu.matmul %27, %28, %cst_23 {dimension_numbers = #tpu.dot_dimension_numbers<[1], [0], [0], [1], [0, 0, 1, 1], [], []>} : vector<16x32xbf16>, vector<32x128xbf16>, vector<16x128xf32> -> vector<16x128xf32>
    %30 = arith.addf %26, %29 : vector<16x128xf32>
    %c0_24 = arith.constant 0 : index
    %c0_25 = arith.constant 0 : index
    %31 = vector.load %arg13[%c0_24, %c0_25] : memref<1x128xf32, #tpu.memory_space<vmem>>, vector<1x128xf32>
    %32 = vector.broadcast %31 : vector<1x128xf32> to vector<16x128xf32>
    %33 = arith.addf %30, %32 : vector<16x128xf32>
    %cst_26 = arith.constant 0.000000e+00 : f32
    %34 = vector.broadcast %cst_26 : f32 to vector<16x128xf32>
    %35 = arith.maximumf %33, %34 : vector<16x128xf32>
    %36 = arith.truncf %35 : vector<16x128xf32> to vector<16x128xbf16>
    %c0_27 = arith.constant 0 : index
    %c0_28 = arith.constant 0 : index
    %37 = vector.load %arg7[%c0_27, %c0_28] : memref<128x512xbf16, #tpu.memory_space<vmem>>, vector<128x512xbf16>
    %cst_29 = arith.constant dense<0.000000e+00> : vector<16x512xf32>
    %38 = tpu.matmul %36, %37, %cst_29 {dimension_numbers = #tpu.dot_dimension_numbers<[1], [0], [0], [1], [0, 0, 1, 1], [], []>} : vector<16x128xbf16>, vector<128x512xbf16>, vector<16x512xf32> -> vector<16x512xf32>
    %39 = arith.truncf %7 : vector<16x128xf32> to vector<16x128xbf16>
    %c0_30 = arith.constant 0 : index
    %c0_31 = arith.constant 0 : index
    %40 = vector.load %arg8[%c0_30, %c0_31] : memref<128x512xbf16, #tpu.memory_space<vmem>>, vector<128x512xbf16>
    %cst_32 = arith.constant dense<0.000000e+00> : vector<16x512xf32>
    %41 = tpu.matmul %39, %40, %cst_32 {dimension_numbers = #tpu.dot_dimension_numbers<[1], [0], [0], [1], [0, 0, 1, 1], [], []>} : vector<16x128xbf16>, vector<128x512xbf16>, vector<16x512xf32> -> vector<16x512xf32>
    %42 = arith.addf %38, %41 : vector<16x512xf32>
    %c0_33 = arith.constant 0 : index
    %c0_34 = arith.constant 0 : index
    %43 = vector.load %arg14[%c0_33, %c0_34] : memref<1x512xf32, #tpu.memory_space<vmem>>, vector<1x512xf32>
    %44 = vector.broadcast %43 : vector<1x512xf32> to vector<16x512xf32>
    %45 = arith.addf %42, %44 : vector<16x512xf32>
    %cst_35 = arith.constant 0.000000e+00 : f32
    %46 = vector.broadcast %cst_35 : f32 to vector<16x512xf32>
    %47 = arith.maximumf %45, %46 : vector<16x512xf32>
    %48 = arith.truncf %47 : vector<16x512xf32> to vector<16x512xbf16>
    %c0_36 = arith.constant 0 : index
    %c0_37 = arith.constant 0 : index
    %49 = vector.load %arg9[%c0_36, %c0_37] : memref<512x64xbf16, #tpu.memory_space<vmem>>, vector<512x64xbf16>
    %cst_38 = arith.constant dense<0.000000e+00> : vector<16x64xf32>
    %50 = tpu.matmul %48, %49, %cst_38 {dimension_numbers = #tpu.dot_dimension_numbers<[1], [0], [0], [1], [0, 0, 1, 1], [], []>} : vector<16x512xbf16>, vector<512x64xbf16>, vector<16x64xf32> -> vector<16x64xf32>
    %c0_39 = arith.constant 0 : index
    %c0_40 = arith.constant 0 : index
    %51 = vector.load %arg15[%c0_39, %c0_40] : memref<1x64xf32, #tpu.memory_space<vmem>>, vector<1x64xf32>
    %52 = vector.broadcast %51 : vector<1x64xf32> to vector<16x64xf32>
    %53 = arith.addf %50, %52 : vector<16x64xf32>
    %c0_41 = arith.constant 0 : index
    %c0_42 = arith.constant 0 : index
    %54 = vector.load %arg16[%c0_41, %c0_42] : memref<16x64xf32, #tpu.memory_space<vmem>>, vector<16x64xf32>
    tpu.vector_store %arg16[%c0_41, %c0_42], %53 {strides = array<i32>} : memref<16x64xf32, #tpu.memory_space<vmem>>, vector<16x64xf32>,
    return
  }
  func.func @transform_0(%arg0: i32) -> (i32, i32) {
    %c0_i32 = arith.constant 0 : i32
    %c0_i32_0 = arith.constant 0 : i32
    return %arg0, %c0_i32 : i32, i32
  }
  func.func @transform_1(%arg0: i32) -> (i32, i32) {
    %c0_i32 = arith.constant 0 : i32
    %c0_i32_0 = arith.constant 0 : i32
    %c0_i32_1 = arith.constant 0 : i32
    return %c0_i32, %c0_i32_0 : i32, i32
  }
  func.func @transform_2(%arg0: i32) -> (i32, i32) {
    %c0_i32 = arith.constant 0 : i32
    %c0_i32_0 = arith.constant 0 : i32
    %c0_i32_1 = arith.constant 0 : i32
    return %c0_i32, %c0_i32_0 : i32, i32
  }
  func.func @transform_3(%arg0: i32) -> (i32, i32) {
    %c0_i32 = arith.constant 0 : i32
    %c0_i32_0 = arith.constant 0 : i32
    %c0_i32_1 = arith.constant 0 : i32
    return %c0_i32, %c0_i32_0 : i32, i32
  }
  func.func @transform_4(%arg0: i32) -> (i32, i32) {
    %c0_i32 = arith.constant 0 : i32
    %c0_i32_0 = arith.constant 0 : i32
    %c0_i32_1 = arith.constant 0 : i32
    return %c0_i32, %c0_i32_0 : i32, i32
  }
  func.func @transform_5(%arg0: i32) -> (i32, i32) {
    %c0_i32 = arith.constant 0 : i32
    %c0_i32_0 = arith.constant 0 : i32
    %c0_i32_1 = arith.constant 0 : i32
    return %c0_i32, %c0_i32_0 : i32, i32
  }
  func.func @transform_6(%arg0: i32) -> (i32, i32) {
    %c0_i32 = arith.constant 0 : i32
    %c0_i32_0 = arith.constant 0 : i32
    %c0_i32_1 = arith.constant 0 : i32
    return %c0_i32, %c0_i32_0 : i32, i32
  }
  func.func @transform_7(%arg0: i32) -> (i32, i32) {
    %c0_i32 = arith.constant 0 : i32
    %c0_i32_0 = arith.constant 0 : i32
    %c0_i32_1 = arith.constant 0 : i32
    return %c0_i32, %c0_i32_0 : i32, i32
  }
  func.func @transform_8(%arg0: i32) -> (i32, i32) {
    %c0_i32 = arith.constant 0 : i32
    %c0_i32_0 = arith.constant 0 : i32
    %c0_i32_1 = arith.constant 0 : i32
    return %c0_i32, %c0_i32_0 : i32, i32
  }
  func.func @transform_9(%arg0: i32) -> (i32, i32) {
    %c0_i32 = arith.constant 0 : i32
    %c0_i32_0 = arith.constant 0 : i32
    %c0_i32_1 = arith.constant 0 : i32
    return %c0_i32, %c0_i32_0 : i32, i32
  }
  func.func @transform_10(%arg0: i32) -> (i32, i32) {
    %c0_i32 = arith.constant 0 : i32
    %c0_i32_0 = arith.constant 0 : i32
    %c0_i32_1 = arith.constant 0 : i32
    return %c0_i32, %c0_i32_0 : i32, i32
  }
  func.func @transform_11(%arg0: i32) -> (i32, i32) {
    %c0_i32 = arith.constant 0 : i32
    %c0_i32_0 = arith.constant 0 : i32
    %c0_i32_1 = arith.constant 0 : i32
    return %c0_i32, %c0_i32_0 : i32, i32
  }
  func.func @transform_12(%arg0: i32) -> (i32, i32) {
    %c0_i32 = arith.constant 0 : i32
    %c0_i32_0 = arith.constant 0 : i32
    %c0_i32_1 = arith.constant 0 : i32
    return %c0_i32, %c0_i32_0 : i32, i32
  }
  func.func @transform_13(%arg0: i32) -> (i32, i32) {
    %c0_i32 = arith.constant 0 : i32
    %c0_i32_0 = arith.constant 0 : i32
    %c0_i32_1 = arith.constant 0 : i32
    return %c0_i32, %c0_i32_0 : i32, i32
  }
  func.func @transform_14(%arg0: i32) -> (i32, i32) {
    %c0_i32 = arith.constant 0 : i32
    %c0_i32_0 = arith.constant 0 : i32
    %c0_i32_1 = arith.constant 0 : i32
    return %c0_i32, %c0_i32_0 : i32, i32
  }
  func.func @transform_15(%arg0: i32) -> (i32, i32) {
    %c0_i32 = arith.constant 0 : i32
    %c0_i32_0 = arith.constant 0 : i32
    return %arg0, %c0_i32 : i32, i32
  }
}

</mosaic_0001>

<bundles_post_ra>
// kernel: _lambda_.1
= control target key start
LH: loop header
LB: loop body
LE: loop exit
PB: predicated region body
PF: predicated region fallthrough
CT: control target
= control target key end

     0   :  { %s2424_s18 = smov 0   ;;  %s2854_s0 = inlined_call_operand.vmem [shape: bf16[32,64], index: 0, kind: input, shape index: {}]   ;;  %s2855_s1 = inlined_call_operand.vmem [shape: bf16[64,128], index: 1, kind: input, shape index: {}]   ;;  %s2856_s2 = inlined_call_operand.vmem [shape: bf16[128,32], index: 2, kind: input, shape index: {}]   ;;  %s2857_s3 = inlined_call_operand.vmem [shape: bf16[32,32], index: 3, kind: input, shape index: {}]   ;;  %s2858_s4 = inlined_call_operand.vmem [shape: bf16[32,128], index: 4, kind: input, shape index: {}]   ;;  %s2859_s5 = inlined_call_operand.vmem [shape: bf16[32,128], index: 5, kind: input, shape index: {}]   ;;  %s2860_s6 = inlined_call_operand.vmem [shape: bf16[128,512], index: 6, kind: input, shape index: {}]   ;;  %s2861_s7 = inlined_call_operand.vmem [shape: bf16[128,512], index: 7, kind: input, shape index: {}]   ;;  %s2862_s8 = inlined_call_operand.vmem [shape: bf16[512,64], index: 8, kind: input, shape index: {}]   ;;  %s2863_s9 = inlined_call_operand.vmem [shape: f32[1,128], index: 9, kind: input, shape index: {}]   ;;  %s2864_s10 = inlined_call_operand.vmem [shape: f32[1,32], index: 10, kind: input, shape index: {}]   ;;  %s2865_s11 = inlined_call_operand.vmem [shape: f32[1,32], index: 11, kind: input, shape index: {}]   ;;  %s2866_s12 = inlined_call_operand.vmem [shape: f32[1,128], index: 12, kind: input, shape index: {}]   ;;  %s2867_s13 = inlined_call_operand.vmem [shape: f32[1,512], index: 13, kind: input, shape index: {}]   ;;  %s2868_s14 = inlined_call_operand.vmem [shape: f32[1,64], index: 14, kind: input, shape index: {}]   ;;  %s2869_s15 = inlined_call_operand.vmem [shape: f32[32,64], index: 15, kind: output, shape index: {}]  }
   0x1 LB: > { %s1909_s19 = sadd.s32 4294967295, %s2339_s18   ;;  %p1913_p0 = scmp.ge.s32.totalorder %s2339_s18, 1  ;;  %s2339_s18 = sphi %s2424_s18, %s25_s18  }
   0x2   : > { %p438_p1 = scmp.lt.s32.totalorder %s2339_s18, 3 }
   0x4   : > { %p439_p2 = pnand %p1913_p0, %p438_p1 }
   0x5   : > { %v2186_v0 = vld [vmem:[%s2855_s1] sm:$0xff] (!%p439_p2)   ;;  %v2341_v1 = vmov (!%p439_p2), 0.0   ;;  %v2187_v2 = vld [vmem:[%s2855_s1 + $0x8] sm:$0xff] (!%p439_p2)   ;;  %vm2342_vm0 = vmmov (!%p439_p2), 0   ;;  %s1914_s24 = sshll.u32 (!%p439_p2), %s1909_s19, 1  ;;  %v2188_v4 = vld [vmem:[%s2855_s1 + $0x10] sm:$0xff] (!%p439_p2)  }
   0x6   : > { %442 = sbr.rel (%p439_p2) target bundleno = 1348 (0x544), region = 80  ;;  %2111 = vmatprep.subr.bf16.mxu0 (!%p439_p2), %v2341_v1  ;;  %2123 = vmatprep.subr.bf16.mxu1 (!%p439_p2), %v2341_v1  ;;  %p487_p3 = scmp.lt.s32.totalorder (!%p439_p2), %s1914_s24, 3  ;;  %v2191_v3 = vld [vmem:[%s2856_s2] sm:$0xff] (!%p439_p2)   ;;  %v2192_v5 = vld [vmem:[%s2856_s2 + $0x8] sm:$0xff] (!%p439_p2)   ;;  %v2189_v6 = vld [vmem:[%s2855_s1 + $0x18] sm:$0xff] (!%p439_p2)   ;;  %vm545_vm1 = vcmask (!%p439_p2), 523264  }
   0x7   : > { %2112 = vmatpush3.bf16.msra.mxu0 (!%p439_p2), %v2186_v0  ;;  %2119 = vmatprep.mubr.msk.bf16.mxu0 (!%p439_p2), %vm2342_vm0, %v2341_v1  ;;  %v2193_v7 = vld [vmem:[%s2856_s2 + $0x10] sm:$0xff] (!%p439_p2)   ;;  %v2194_v9 = vld [vmem:[%s2856_s2 + $0x18] sm:$0xff] (!%p439_p2)   ;;  %v2195_v10 = vld [vmem:[%s2856_s2 + $0x20] sm:$0xff] (!%p439_p2)   ;;  %v2343_v28 = vmov (!%p439_p2), 0   ;;  %vm731_vm2 = vcmask (!%p439_p2), 261120  }
   0x8   : > { %2113 = vmatprep.subr.bf16.mxu0 (!%p439_p2), %v2341_v1  ;;  %2139 = vmatprep.mubr.msk.bf16.mxu1 (!%p439_p2), %vm2342_vm0, %v2341_v1  ;;  %v2196_v11 = vld [vmem:[%s2856_s2 + $0x28] sm:$0xff] (!%p439_p2)   ;;  %v2197_v12 = vld [vmem:[%s2856_s2 + $0x30] sm:$0xff] (!%p439_p2)   ;;  %v2198_v13 = vld [vmem:[%s2856_s2 + $0x38] sm:$0xff] (!%p439_p2)  }
   0x9   : > { %2124 = vmatpush3.bf16.msra.mxu1 (!%p439_p2), %v2191_v3  ;;  %v2201_v14 = vld [vmem:[%s2861_s7 + $0x4] ss:$16 sps:$4 sm:$0xff] (!%p439_p2)   ;;  %v1918_v15 = vld [vmem:[%s2863_s9] ss:$0 sm:$0xff] (!%p439_p2)  ;;  %v2224_v42 = vld [vmem:[%s2857_s3 + $0x8] sm:$0xff] (!%p439_p2)  }
   0xa   : > { %2125 = vmatprep.subr.bf16.mxu1 (!%p439_p2), %v2341_v1  ;;  %v2199_v24 = vld [vmem:[%s2861_s7] ss:$16 sps:$4 sm:$0xff] (!%p439_p2)   ;;  %v2204_v26 = vld [vmem:[%s2861_s7 + $0x24] ss:$16 sps:$4 sm:$0xff] (!%p439_p2)   ;;  %v2226_v54 = vld [vmem:[%s2859_s5 + $0x8] sm:$0xff] (!%p439_p2)  }
   0xb   : > { %2114 = vmatpush3.bf16.msra.mxu0 (!%p439_p2), %v2187_v2  ;;  %v2202_v27 = vld [vmem:[%s2861_s7 + $0x20] ss:$16 sps:$4 sm:$0xff] (!%p439_p2)   ;;  %v2207_v29 = vld [vmem:[%s2861_s7 + $0x44] ss:$16 sps:$4 sm:$0xff] (!%p439_p2)   ;;  %v2228_v56 = vld [vmem:[%s2858_s4 + $0x8] sm:$0xff] (!%p439_p2)  }
   0xc   : > { %2115 = vmatprep.subr.bf16.mxu0 (!%p439_p2), %v2341_v1  ;;  %v2205_v30 = vld [vmem:[%s2861_s7 + $0x40] ss:$16 sps:$4 sm:$0xff] (!%p439_p2)   ;;  %v2210_v31 = vld [vmem:[%s2861_s7 + $0x64] ss:$16 sps:$4 sm:$0xff] (!%p439_p2)   ;;  %v2231_v57 = vld [vmem:[%s2861_s7 + $0xc] ss:$16 sps:$4 sm:$0xff] (!%p439_p2)  }
   0xd   : > { %s2871_s24 = smov (!%p487_p3, %s1914_s24), 3  ;;  %2126 = vmatpush3.bf16.msra.mxu1 %v2192_v5  ;;  %v2208_v32 = vld [vmem:[%s2861_s7 + $0x60] ss:$16 sps:$4 sm:$0xff]   ;;  %v2213_v33 = vld [vmem:[%s2861_s7 + $0x84] ss:$16 sps:$4 sm:$0xff]  }
   0xe   : > { %s1915_s16 = sshll.u32 %s2871_s24, 2  ;;  %2127 = vmatprep.subr.bf16.mxu1 %v2341_v1  ;;  %v2211_v34 = vld [vmem:[%s2861_s7 + $0x80] ss:$16 sps:$4 sm:$0xff]   ;;  %v2216_v35 = vld [vmem:[%s2861_s7 + $0xa4] ss:$16 sps:$4 sm:$0xff]  }
   0xf   : > { %s490_s20 = scalar_lea.vmem %s2854_s0, %s1915_s16  ;;  %2116 = vmatpush3.bf16.msra.mxu0 %v2188_v4  ;;  %v2214_v36 = vld [vmem:[%s2861_s7 + $0xa0] ss:$16 sps:$4 sm:$0xff]   ;;  %v2219_v37 = vld [vmem:[%s2861_s7 + $0xc4] ss:$16 sps:$4 sm:$0xff]   ;;  %s1917_s16 = sshll.u32 %s2871_s24, 3 }
  0x10   : > { %2117 = vmatprep.subr.bf16.mxu0 %v2341_v1  ;;  %v2190_v8 = vld [vmem:[%s490_s20] sm:$0xff]   ;;  %s496_s20 = scalar_lea.vmem %s2869_s15, %s1917_s16 }
  0x11   : > { %2128 = vmatpush3.bf16.msra.mxu1 %v2193_v7  ;;  %v2217_v38 = vld [vmem:[%s2861_s7 + $0xc0] ss:$16 sps:$4 sm:$0xff]   ;;  %v2222_v39 = vld [vmem:[%s2861_s7 + $0xe4] ss:$16 sps:$4 sm:$0xff]  }
  0x12   : > { %2129 = vmatprep.subr.bf16.mxu1 %v2341_v1  ;;  %v2220_v40 = vld [vmem:[%s2861_s7 + $0xe0] ss:$16 sps:$4 sm:$0xff]   ;;  %v2255_v59 = vld [vmem:[%s2860_s6 + $0x4] ss:$16 sps:$4 sm:$0xff]  }
  0x13   : > { %2118 = vmatpush3.bf16.msra.mxu0 %v2189_v6  ;;  %v2223_v41 = vld [vmem:[%s2857_s3] sm:$0xff]  }
  0x14   : > { %2143 = vmatprep.subr.bf16.mxu0 %v2341_v1  ;;  %v1925_v43 = vld [vmem:[%s2864_s10] ss:$0 sm:$0xff]  ;;  %v2261_v60 = vld [vmem:[%s2860_s6 + $0x24] ss:$16 sps:$4 sm:$0xff]  }
  0x15   : > { %2130 = vmatpush3.bf16.msra.mxu1 %v2194_v9  ;;  %v2225_v52 = vld [vmem:[%s2859_s5] sm:$0xff]  }
  0x16   : > { %2120 = vmatmul.mubr.msk.bf16.vlgmr.msra.gmra.mrb[0].mxu0 %vm545_vm1, %v2190_v8  ;;  %2131 = vmatprep.subr.bf16.mxu1 %v2341_v1  ;;  %v2227_v55 = vld [vmem:[%s2858_s4] sm:$0xff]  }
  0x17   : > { %2147 = vmatprep.mubr.msk.bf16.mxu0 %vm2342_vm0, %v2341_v1  ;;  %2144 = vmatpush3.bf16.msra.mxu0 %v2223_v41  ;;  %v2253_v58 = vld [vmem:[%s2860_s6] ss:$16 sps:$4 sm:$0xff]   ;;  %v2267_v62 = vld [vmem:[%s2860_s6 + $0x44] ss:$16 sps:$4 sm:$0xff]   ;;  %v2270_v41 = vld [vmem:[%s2860_s6 + $0x4c] ss:$16 sps:$4 sm:$0xff]  }
  0x18   : > { %2145 = vmatprep.subr.bf16.mxu0 %v2341_v1  ;;  %v2259_v61 = vld [vmem:[%s2860_s6 + $0x20] ss:$16 sps:$4 sm:$0xff]   ;;  %v2273_v0 = vld [vmem:[%s2860_s6 + $0x64] ss:$16 sps:$4 sm:$0xff]  }
  0x19   : > { %2132 = vmatpush3.bf16.msra.mxu1 %v2195_v10  ;;  %v2265_v63 = vld [vmem:[%s2860_s6 + $0x40] ss:$16 sps:$4 sm:$0xff]   ;;  %v2279_v2 = vld [vmem:[%s2860_s6 + $0x84] ss:$16 sps:$4 sm:$0xff]  }
  0x1a   : > { %2133 = vmatprep.subr.bf16.mxu1 %v2341_v1  ;;  %v2277_v3 = vld [vmem:[%s2860_s6 + $0x80] ss:$16 sps:$4 sm:$0xff]   ;;  %v2285_v4 = vld [vmem:[%s2860_s6 + $0xa4] ss:$16 sps:$4 sm:$0xff]  }
  0x1b   : > { %2146 = vmatpush3.bf16.msra.mxu0 %v2224_v42  ;;  %v2283_v5 = vld [vmem:[%s2860_s6 + $0xa0] ss:$16 sps:$4 sm:$0xff]   ;;  %v2268_v42 = vld [vmem:[%s2860_s6 + $0x48] ss:$16 sps:$4 sm:$0xff]  }
  0x1c   : > { %2151 = vmatprep.subr.bf16.mxu0 %v2341_v1  ;;  %v1934_v6 = vld [vmem:[%s2865_s11] ss:$0 sm:$0xff] }
  0x1d   : > { %2134 = vmatpush3.bf16.msra.mxu1 %v2196_v11 }
  0x1e   : > { %2135 = vmatprep.subr.bf16.mxu1 %v2341_v1 }
  0x21   : > { %2136 = vmatpush3.bf16.msra.mxu1 %v2197_v12 }
  0x22   : > { %2137 = vmatprep.subr.bf16.mxu1 %v2341_v1 }
  0x25   : > { %2138 = vmatpush3.bf16.msra.mxu1 %v2198_v13 }
  0x26   : > { %1132 = vmatprep.subr.bf16.mxu1 %v2201_v14 }
  0xe9   : > { %v583_v16 = vpop.f32.mrb[0].mxu0 }
  0xea   : > { %v584_v17 = vadd.f32 %v1918_v15, %v583_v16  ;;  %v2121_v18 = vpop.f32.mrb[1].mxu0 }
  0xeb   : > { %v586_v19 = vpop.f32.mrb[2].mxu0 }
  0xec   : > { %v587_v20 = vadd.f32 %v1918_v15, %v586_v19  ;;  %v2122_v21 = vpop.f32.mrb[3].mxu0  ;;  %v590_v22 = vmax.f32 %v584_v17, 0.0  ;;  %v2229_v15 = vld [vmem:[%s2861_s7 + $0x8] ss:$16 sps:$4 sm:$0xff]   ;;  %v2234_v17 = vld [vmem:[%s2861_s7 + $0x2c] ss:$16 sps:$4 sm:$0xff]  }
  0xed   : > { %v2232_v21 = vld [vmem:[%s2861_s7 + $0x28] ss:$16 sps:$4 sm:$0xff]  }
  0xee   : > { %v591_v23 = vmax.f32 %v587_v20, 0.0 }
  0xf0   : > { %v2503_v25 = vpack.c.bf16 %v591_v23, %v590_v22  ;;  %v2237_v23 = vld [vmem:[%s2861_s7 + $0x4c] ss:$16 sps:$4 sm:$0xff]  }
  0xf2   : > { %2140 = vmatmul.mubr.bf16.vlgmr.msra.gmra.mrb[0].mxu1 %v2503_v25 }
  0xf3   : > { %1133 = vmatpush1.bf16.msra.mxu1 %v2199_v24  ;;  %1164 = vmatprep.mubr.bf16.mxu1 %v2343_v28  ;;  %v2235_v24 = vld [vmem:[%s2861_s7 + $0x48] ss:$16 sps:$4 sm:$0xff]  }
  0xf4   : > { %1134 = vmatprep.subr.bf16.mxu1 %v2204_v26  ;;  %v2240_v26 = vld [vmem:[%s2861_s7 + $0x6c] ss:$16 sps:$4 sm:$0xff]  }
  0xf7   : > { %1135 = vmatpush1.bf16.msra.mxu1 %v2202_v27  ;;  %v2238_v27 = vld [vmem:[%s2861_s7 + $0x68] ss:$16 sps:$4 sm:$0xff]  }
  0xf8   : > { %1136 = vmatprep.subr.bf16.mxu1 %v2207_v29  ;;  %v2243_v29 = vld [vmem:[%s2861_s7 + $0x8c] ss:$16 sps:$4 sm:$0xff]  }
  0xfb   : > { %1137 = vmatpush1.bf16.msra.mxu1 %v2205_v30  ;;  %v2241_v30 = vld [vmem:[%s2861_s7 + $0x88] ss:$16 sps:$4 sm:$0xff]  }
  0xfc   : > { %1138 = vmatprep.subr.bf16.mxu1 %v2210_v31  ;;  %v2246_v31 = vld [vmem:[%s2861_s7 + $0xac] ss:$16 sps:$4 sm:$0xff]  }
  0xff   : > { %1139 = vmatpush1.bf16.msra.mxu1 %v2208_v32  ;;  %v2244_v32 = vld [vmem:[%s2861_s7 + $0xa8] ss:$16 sps:$4 sm:$0xff]  }
 0x100   : > { %1140 = vmatprep.subr.bf16.mxu1 %v2213_v33  ;;  %v2249_v33 = vld [vmem:[%s2861_s7 + $0xcc] ss:$16 sps:$4 sm:$0xff]  }
 0x103   : > { %1141 = vmatpush1.bf16.msra.mxu1 %v2211_v34  ;;  %v2247_v34 = vld [vmem:[%s2861_s7 + $0xc8] ss:$16 sps:$4 sm:$0xff]  }
 0x104   : > { %1142 = vmatprep.subr.bf16.mxu1 %v2216_v35  ;;  %v2252_v35 = vld [vmem:[%s2861_s7 + $0xec] ss:$16 sps:$4 sm:$0xff]  }
 0x107   : > { %1143 = vmatpush1.bf16.msra.mxu1 %v2214_v36  ;;  %v2250_v36 = vld [vmem:[%s2861_s7 + $0xe8] ss:$16 sps:$4 sm:$0xff]  }
 0x108   : > { %1144 = vmatprep.subr.bf16.mxu1 %v2219_v37  ;;  %v2258_v37 = vld [vmem:[%s2860_s6 + $0xc] ss:$16 sps:$4 sm:$0xff]  }
 0x10b   : > { %1145 = vmatpush1.bf16.msra.mxu1 %v2217_v38  ;;  %v2256_v38 = vld [vmem:[%s2860_s6 + $0x8] ss:$16 sps:$4 sm:$0xff]  }
 0x10c   : > { %1146 = vmatprep.subr.bf16.mxu1 %v2222_v39  ;;  %v2264_v39 = vld [vmem:[%s2860_s6 + $0x2c] ss:$16 sps:$4 sm:$0xff]  }
 0x10f   : > { %1147 = vmatpush1.bf16.msra.mxu1 %v2220_v40  ;;  %v2262_v40 = vld [vmem:[%s2860_s6 + $0x28] ss:$16 sps:$4 sm:$0xff]  }
 0x110   : > { %1378 = vmatprep.subr.bf16.mxu1 %v2255_v59 }
 0x112   : > { %1165 = vmatmul.mubr.bf16.vlgmr.msra.gmra.mrb[4].mxu1 %v2503_v25 }
 0x113   : > { %1410 = vmatprep.mubr.bf16.mxu1 %v2343_v28  ;;  %1379 = vmatpush1.bf16.msra.mxu1 %v2253_v58  ;;  %v1944_v58 = vld [vmem:[%s2866_s12] ss:$0 sm:$0xff] }
 0x114   : > { %1380 = vmatprep.subr.bf16.mxu1 %v2261_v60 }
 0x117   : > { %1381 = vmatpush1.bf16.msra.mxu1 %v2259_v61 }
 0x118   : > { %1382 = vmatprep.subr.bf16.mxu1 %v2267_v62 }
 0x11b   : > { %1383 = vmatpush1.bf16.msra.mxu1 %v2265_v63 }
 0x11c   : > { %1384 = vmatprep.subr.bf16.mxu1 %v2273_v0 }
 0x1c5   : > { %v698_v44 = vpop.f32.mrb[0].mxu1 }
 0x1c6   : > { %v699_v45 = vadd.f32 %v1925_v43, %v698_v44  ;;  %v2141_v46 = vpop.f32.mrb[1].mxu1  ;;  %v2280_v44 = vld [vmem:[%s2860_s6 + $0x88] ss:$16 sps:$4 sm:$0xff]  }
 0x1c7   : > { %v701_v47 = vpop.f32.mrb[2].mxu1  ;;  %v2286_v46 = vld [vmem:[%s2860_s6 + $0xa8] ss:$16 sps:$4 sm:$0xff]  }
 0x1c8   : > { %v702_v48 = vadd.f32 %v1925_v43, %v701_v47  ;;  %v2142_v49 = vpop.f32.mrb[3].mxu1  ;;  %v705_v50 = vmax.f32 %v699_v45, 0.0  ;;  %v2282_v43 = vld [vmem:[%s2860_s6 + $0x8c] ss:$16 sps:$4 sm:$0xff]   ;;  %v2291_v47 = vld [vmem:[%s2860_s6 + $0xc4] ss:$16 sps:$4 sm:$0xff]  }
 0x1c9   : > { %v2288_v45 = vld [vmem:[%s2860_s6 + $0xac] ss:$16 sps:$4 sm:$0xff]   ;;  %v2289_v49 = vld [vmem:[%s2860_s6 + $0xc0] ss:$16 sps:$4 sm:$0xff]  }
 0x1ca   : > { %v706_v51 = vmax.f32 %v702_v48, 0.0  ;;  %v2294_v48 = vld [vmem:[%s2860_s6 + $0xcc] ss:$16 sps:$4 sm:$0xff]  }
 0x1cc   : > { %v707_v53 = vpack.c.bf16 %v706_v51, %v705_v50  ;;  %v2292_v50 = vld [vmem:[%s2860_s6 + $0xc8] ss:$16 sps:$4 sm:$0xff]   ;;  %v2297_v51 = vld [vmem:[%s2860_s6 + $0xe4] ss:$16 sps:$4 sm:$0xff]  }
 0x1ce   : > { %2148 = vmatmul.mubr.msk.bf16.vlgmr.msra.gmra.mrb[4].mxu0 %vm731_vm2, %v707_v53 }
 0x1cf   : > { %2152 = vmatpush3.bf16.msra.mxu0 %v2225_v52  ;;  %2155 = vmatprep.mubr.msk.bf16.mxu0 %vm2342_vm0, %v2341_v1  ;;  %v2300_v52 = vld [vmem:[%s2860_s6 + $0xec] ss:$16 sps:$4 sm:$0xff]  }
 0x1d0   : > { %2153 = vmatprep.subr.bf16.mxu0 %v2341_v1 }
 0x1d3   : > { %2154 = vmatpush3.bf16.msra.mxu0 %v2226_v54  ;;  %v2298_v54 = vld [vmem:[%s2860_s6 + $0xe8] ss:$16 sps:$4 sm:$0xff]  }
 0x1d4   : > { %2159 = vmatprep.subr.bf16.mxu0 %v2341_v1 }
 0x1d6   : > { %2156 = vmatmul.mubr.msk.bf16.vlgmr.msra.gmra.mrb[8].mxu0 %vm731_vm2, %v707_v53  ;;  %v2295_v53 = vld [vmem:[%s2860_s6 + $0xe0] ss:$16 sps:$4 sm:$0xff]  }
 0x1d7   : > { %2163 = vmatprep.mubr.msk.bf16.mxu0 %vm2342_vm0, %v2341_v1  ;;  %2160 = vmatpush3.bf16.msra.mxu0 %v2227_v55  ;;  %v2301_v55 = vld [vmem:[%s2862_s8 + $0x40] sm:$0xff]  }
 0x1d8   : > { %2161 = vmatprep.subr.bf16.mxu0 %v2341_v1  ;;  %v2271_v1 = vld [vmem:[%s2860_s6 + $0x60] ss:$16 sps:$4 sm:$0xff]  }
 0x1d9   : > { %1385 = vmatpush1.bf16.msra.mxu1 %v2271_v1 }
 0x1da   : > { %1386 = vmatprep.subr.bf16.mxu1 %v2279_v2 }
 0x1db   : > { %2162 = vmatpush3.bf16.msra.mxu0 %v2228_v56  ;;  %v2302_v56 = vld [vmem:[%s2862_s8 + $0xc0] sm:$0xff]  }
 0x1dc   : > { %1175 = vmatprep.subr.bf16.mxu0 %v2231_v57 }
 0x1dd   : > { %1387 = vmatpush1.bf16.msra.mxu1 %v2277_v3 }
 0x1de   : > { %1388 = vmatprep.subr.bf16.mxu1 %v2285_v4  ;;  %v2303_v4 = vld [vmem:[%s2862_s8] sm:$0xff]  }
 0x1e1   : > { %1389 = vmatpush1.bf16.msra.mxu1 %v2283_v5  ;;  %v2304_v5 = vld [vmem:[%s2862_s8 + $0x80] sm:$0xff]  }
 0x1e2   : > { %1390 = vmatprep.subr.bf16.mxu1 %v2291_v47 }
 0x1e5   : > { %1391 = vmatpush1.bf16.msra.mxu1 %v2289_v49 }
 0x1e6   : > { %1392 = vmatprep.subr.bf16.mxu1 %v2297_v51 }
 0x1e9   : > { %1393 = vmatpush1.bf16.msra.mxu1 %v2295_v53 }
 0x1ea   : > { %2067 = vmatprep.subr.bf16.mxu1 %v2301_v55 }
 0x2a1   : > { %v769_v7 = vpop.f32.mrb[4].mxu0 }
 0x2a2   : > { %v770_v8 = vadd.f32 %v1934_v6, %v769_v7  ;;  %v2149_v9 = vpop.f32.mrb[5].mxu0  ;;  %v2305_v7 = vld [vmem:[%s2862_s8 + $0x48] sm:$0xff]  }
 0x2a3   : > { %v772_v10 = vpop.f32.mrb[6].mxu0  ;;  %v2307_v9 = vld [vmem:[%s2862_s8 + $0x8] sm:$0xff]  }
 0x2a4   : > { %v773_v11 = vadd.f32 %v1934_v6, %v772_v10  ;;  %v2150_v12 = vpop.f32.mrb[7].mxu0  ;;  %v776_v13 = vmax.f32 %v770_v8, 0.0  ;;  %v2306_v8 = vld [vmem:[%s2862_s8 + $0xc8] sm:$0xff]  }
 0x2a5   : > { %v2308_v10 = vld [vmem:[%s2862_s8 + $0x88] sm:$0xff]   ;;  %v2310_v12 = vld [vmem:[%s2862_s8 + $0xd0] sm:$0xff]  }
 0x2a6   : > { %v777_v14 = vmax.f32 %v773_v11, 0.0  ;;  %v2309_v11 = vld [vmem:[%s2862_s8 + $0x50] sm:$0xff]  }
 0x2a8   : > { %v778_v16 = vpack.c.bf16 %v777_v14, %v776_v13  ;;  %v2311_v13 = vld [vmem:[%s2862_s8 + $0x10] sm:$0xff]  }
 0x2a9   : > { %v2631_v18 = vpop.f32.mrb[8].mxu0  ;;  %v2312_v14 = vld [vmem:[%s2862_s8 + $0x90] sm:$0xff]  }
 0x2aa   : > { %v2157_v19 = vpop.f32.mrb[9].mxu0  ;;  %2164 = vmatmul.mubr.msk.bf16.vlgmr.msra.gmra.mrb[12].mxu0 %vm731_vm2, %v778_v16  ;;  %v2314_v16 = vld [vmem:[%s2862_s8 + $0xd8] sm:$0xff]  }
 0x2ab   : > { %1176 = vmatpush1.bf16.msra.mxu0 %v2229_v15  ;;  %v2634_v20 = vpop.f32.mrb[10].mxu0  ;;  %1207 = vmatprep.mubr.bf16.mxu0 %v2343_v28  ;;  %v2313_v15 = vld [vmem:[%s2862_s8 + $0x58] sm:$0xff]   ;;  %v2317_v19 = vld [vmem:[%s2862_s8 + $0x60] sm:$0xff]  }
 0x2ac   : > { %v2158_v22 = vpop.f32.mrb[11].mxu0  ;;  %1177 = vmatprep.subr.bf16.mxu0 %v2234_v17  ;;  %v2315_v17 = vld [vmem:[%s2862_s8 + $0x18] sm:$0xff]  }
 0x2ad   : > { %v2320_v22 = vld [vmem:[%s2862_s8 + $0xa0] sm:$0xff]  }
 0x2af   : > { %1178 = vmatpush1.bf16.msra.mxu0 %v2232_v21  ;;  %v2319_v21 = vld [vmem:[%s2862_s8 + $0x20] sm:$0xff]  }
 0x2b0   : > { %1179 = vmatprep.subr.bf16.mxu0 %v2237_v23  ;;  %v2321_v23 = vld [vmem:[%s2862_s8 + $0x68] sm:$0xff]  }
 0x2b3   : > { %1180 = vmatpush1.bf16.msra.mxu0 %v2235_v24  ;;  %v2322_v24 = vld [vmem:[%s2862_s8 + $0xe8] sm:$0xff]  }
 0x2b4   : > { %1181 = vmatprep.subr.bf16.mxu0 %v2240_v26  ;;  %v2323_v26 = vld [vmem:[%s2862_s8 + $0x28] sm:$0xff]  }
 0x2b7   : > { %1182 = vmatpush1.bf16.msra.mxu0 %v2238_v27  ;;  %v2324_v27 = vld [vmem:[%s2862_s8 + $0xa8] sm:$0xff]  }
 0x2b8   : > { %1183 = vmatprep.subr.bf16.mxu0 %v2243_v29  ;;  %v2325_v29 = vld [vmem:[%s2862_s8 + $0x70] sm:$0xff]  }
 0x2bb   : > { %1184 = vmatpush1.bf16.msra.mxu0 %v2241_v30  ;;  %v2326_v30 = vld [vmem:[%s2862_s8 + $0xf0] sm:$0xff]  }
 0x2bc   : > { %1185 = vmatprep.subr.bf16.mxu0 %v2246_v31  ;;  %v2327_v31 = vld [vmem:[%s2862_s8 + $0x30] sm:$0xff]  }
 0x2bf   : > { %1186 = vmatpush1.bf16.msra.mxu0 %v2244_v32  ;;  %v2328_v32 = vld [vmem:[%s2862_s8 + $0xb0] sm:$0xff]  }
 0x2c0   : > { %1187 = vmatprep.subr.bf16.mxu0 %v2249_v33  ;;  %v2329_v33 = vld [vmem:[%s2862_s8 + $0x78] sm:$0xff]  }
 0x2c3   : > { %1188 = vmatpush1.bf16.msra.mxu0 %v2247_v34  ;;  %v2330_v34 = vld [vmem:[%s2862_s8 + $0xf8] sm:$0xff]  }
 0x2c4   : > { %1189 = vmatprep.subr.bf16.mxu0 %v2252_v35  ;;  %v2331_v35 = vld [vmem:[%s2862_s8 + $0x38] sm:$0xff]  }
 0x2c7   : > { %1190 = vmatpush1.bf16.msra.mxu0 %v2250_v36  ;;  %v2332_v36 = vld [vmem:[%s2862_s8 + $0xb8] sm:$0xff]  }
 0x2c8   : > { %1421 = vmatprep.subr.bf16.mxu0 %v2258_v37  ;;  %v1466_v37 = vlaneseq }
 0x2ca   : > { %1208 = vmatmul.mubr.bf16.vlgmr.msra.gmra.mrb[16].mxu0 %v2503_v25  ;;  %v2276_v25 = vld [vmem:[%s2860_s6 + $0x6c] ss:$16 sps:$4 sm:$0xff]  }
 0x2cb   : > { %1422 = vmatpush1.bf16.msra.mxu0 %v2256_v38  ;;  %1453 = vmatprep.mubr.bf16.mxu0 %v2343_v28  ;;  %v2274_v28 = vld [vmem:[%s2860_s6 + $0x68] ss:$16 sps:$4 sm:$0xff]   ;;  %v1467_v38 = vshrl.u32 %v1466_v37, 7 }
 0x2cc   : > { %1423 = vmatprep.subr.bf16.mxu0 %v2264_v39 }
 0x2cd   : > { %v1468_v39 = vsub.s32 0, %v1467_v38 }
 0x2cf   : > { %1424 = vmatpush1.bf16.msra.mxu0 %v2262_v40  ;;  %v1476_v40 = vsub.s32 2, %v1467_v38 }
 0x2d0   : > { %1425 = vmatprep.subr.bf16.mxu0 %v2270_v41  ;;  %v1464_v41 = vld [vmem:[%s2867_s13] sm:$0xf] }
 0x2d3   : > { %1426 = vmatpush1.bf16.msra.mxu0 %v2268_v42  ;;  %v1472_v42 = vsub.s32 1, %v1467_v38 }
 0x2d4   : > { %1427 = vmatprep.subr.bf16.mxu0 %v2276_v25  ;;  %v1480_v25 = vsub.s32 3, %v1467_v38 }
 0x2d7   : > { %1428 = vmatpush1.bf16.msra.mxu0 %v2274_v28  ;;  %v1469_v28 = vrot.slane %v1464_v41, %v1468_v39 }
 0x2d8   : > { %1429 = vmatprep.subr.bf16.mxu0 %v2282_v43  ;;  %v1477_v43 = vrot.slane %v1464_v41, %v1476_v40 }
 0x2db   : > { %1430 = vmatpush1.bf16.msra.mxu0 %v2280_v44  ;;  %v1473_v44 = vrot.slane %v1464_v41, %v1472_v42 }
 0x2dc   : > { %1431 = vmatprep.subr.bf16.mxu0 %v2288_v45  ;;  %v1481_v45 = vrot.slane %v1464_v41, %v1480_v25 }
 0x2df   : > { %1432 = vmatpush1.bf16.msra.mxu0 %v2286_v46 }
 0x2e0   : > { %1433 = vmatprep.subr.bf16.mxu0 %v2294_v48 }
 0x2e3   : > { %1434 = vmatpush1.bf16.msra.mxu0 %v2292_v50 }
 0x2e4   : > { %1435 = vmatprep.subr.bf16.mxu0 %v2300_v52 }
 0x2e7   : > { %1436 = vmatpush1.bf16.msra.mxu0 %v2298_v54 }
 0x2e8   : > { %2089 = vmatprep.subr.bf16.mxu0 %v2302_v56 }
 0x37d   : > { %v889_v57 = vpop.f32.mrb[12].mxu0 }
 0x37e   : > { %v890_v59 = vadd.f32 %v889_v57, %v2631_v18  ;;  %v2165_v60 = vpop.f32.mrb[13].mxu0  ;;  %v2316_v18 = vld [vmem:[%s2862_s8 + $0x98] sm:$0xff]  }
 0x37f   : > { %v892_v61 = vpop.f32.mrb[14].mxu0 }
 0x380   : > { %v903_v62 = vadd.f32 %v1944_v58, %v890_v59  ;;  %v893_v63 = vadd.f32 %v892_v61, %v2634_v20  ;;  %v2166_v0 = vpop.f32.mrb[15].mxu0  ;;  %v2318_v20 = vld [vmem:[%s2862_s8 + $0xe0] sm:$0xff]  }
 0x382   : > { %v904_v1 = vadd.f32 %v1944_v58, %v893_v63  ;;  %v905_v2 = vmax.f32 %v903_v62, 0.0 }
 0x384   : > { %v906_v3 = vmax.f32 %v904_v1, 0.0 }
 0x386   : > { %v907_v6 = vpack.c.bf16 %v906_v3, %v905_v2 }
 0x388   : > { %1411 = vmatmul.mubr.bf16.vlgmr.msra.gmra.mrb[4].mxu1 %v907_v6  ;;  %1454 = vmatmul.mubr.bf16.vlgmr.msra.gmra.mrb[16].mxu0 %v907_v6 }
 0x389   : > { %2068 = vmatpush3.bf16.msra.mxu1 %v2303_v4  ;;  %2090 = vmatpush3.bf16.msra.mxu0 %v2304_v5 }
 0x38a   : > { %2069 = vmatprep.subr.bf16.mxu1 %v2305_v7  ;;  %2091 = vmatprep.subr.bf16.mxu0 %v2306_v8 }
 0x38d   : > { %2070 = vmatpush3.bf16.msra.mxu1 %v2307_v9  ;;  %2092 = vmatpush3.bf16.msra.mxu0 %v2308_v10 }
 0x38e   : > { %2071 = vmatprep.subr.bf16.mxu1 %v2309_v11  ;;  %2093 = vmatprep.subr.bf16.mxu0 %v2310_v12  ;;  %v2009_v12 = vld [vmem:[%s2868_s14] ss:$0 sm:$0xff] }
 0x391   : > { %2072 = vmatpush3.bf16.msra.mxu1 %v2311_v13  ;;  %2094 = vmatpush3.bf16.msra.mxu0 %v2312_v14 }
 0x392   : > { %2073 = vmatprep.subr.bf16.mxu1 %v2313_v15  ;;  %2095 = vmatprep.subr.bf16.mxu0 %v2314_v16 }
 0x395   : > { %2074 = vmatpush3.bf16.msra.mxu1 %v2315_v17  ;;  %2096 = vmatpush3.bf16.msra.mxu0 %v2316_v18 }
 0x396   : > { %2075 = vmatprep.subr.bf16.mxu1 %v2317_v19  ;;  %2097 = vmatprep.subr.bf16.mxu0 %v2318_v20 }
 0x399   : > { %2076 = vmatpush3.bf16.msra.mxu1 %v2319_v21  ;;  %2098 = vmatpush3.bf16.msra.mxu0 %v2320_v22 }
 0x39a   : > { %2077 = vmatprep.subr.bf16.mxu1 %v2321_v23  ;;  %2099 = vmatprep.subr.bf16.mxu0 %v2322_v24 }
 0x39d   : > { %2078 = vmatpush3.bf16.msra.mxu1 %v2323_v26  ;;  %2100 = vmatpush3.bf16.msra.mxu0 %v2324_v27 }
 0x39e   : > { %2079 = vmatprep.subr.bf16.mxu1 %v2325_v29  ;;  %2101 = vmatprep.subr.bf16.mxu0 %v2326_v30 }
 0x3a1   : > { %2080 = vmatpush3.bf16.msra.mxu1 %v2327_v31  ;;  %2102 = vmatpush3.bf16.msra.mxu0 %v2328_v32 }
 0x3a2   : > { %2081 = vmatprep.subr.bf16.mxu1 %v2329_v33  ;;  %2103 = vmatprep.subr.bf16.mxu0 %v2330_v34 }
 0x3a5   : > { %2082 = vmatpush3.bf16.msra.mxu1 %v2331_v35  ;;  %2104 = vmatpush3.bf16.msra.mxu0 %v2332_v36 }
 0x45b   : > { %v1412_v46 = vpop.f32.mrb[4].mxu1  ;;  %v1455_v47 = vpop.f32.mrb[16].mxu0 }
 0x45c   : > { %v1486_v48 = vadd.f32 %v1469_v28, %v1412_v46  ;;  %v1488_v49 = vadd.f32 %v1477_v43, %v1455_v47  ;;  %v1414_v50 = vpop.f32.mrb[5].mxu1  ;;  %v1457_v51 = vpop.f32.mrb[17].mxu0 }
 0x45d   : > { %v1487_v52 = vadd.f32 %v1473_v44, %v1414_v50  ;;  %v1489_v53 = vadd.f32 %v1481_v45, %v1457_v51  ;;  %v1416_v54 = vpop.f32.mrb[6].mxu1  ;;  %v1459_v55 = vpop.f32.mrb[18].mxu0 }
 0x45e   : > { %v1490_v56 = vadd.f32 %v1469_v28, %v1416_v54  ;;  %v1492_v57 = vadd.f32 %v1477_v43, %v1459_v55  ;;  %v1418_v58 = vpop.f32.mrb[7].mxu1  ;;  %v1461_v59 = vpop.f32.mrb[19].mxu0  ;;  %v1494_v62 = vmax.f32 %v1486_v48, 0.0  ;;  %v1496_v63 = vmax.f32 %v1488_v49, 0.0 }
 0x45f   : > { %v1491_v60 = vadd.f32 %v1473_v44, %v1418_v58  ;;  %v1493_v61 = vadd.f32 %v1481_v45, %v1461_v59  ;;  %v1495_v2 = vmax.f32 %v1487_v52, 0.0  ;;  %v1497_v3 = vmax.f32 %v1489_v53, 0.0 }
 0x460   : > { %v1498_v0 = vmax.f32 %v1490_v56, 0.0  ;;  %v1500_v1 = vmax.f32 %v1492_v57, 0.0 }
 0x461   : > { %v1499_v4 = vmax.f32 %v1491_v60, 0.0  ;;  %v1501_v5 = vmax.f32 %v1493_v61, 0.0 }
 0x462   : > { %v1502_v6 = vpack.c.bf16 %v1498_v0, %v1494_v62  ;;  %v1504_v7 = vpack.c.bf16 %v1500_v1, %v1496_v63 }
 0x463   : > { %v1503_v8 = vpack.c.bf16 %v1499_v4, %v1495_v2  ;;  %v1505_v9 = vpack.c.bf16 %v1501_v5, %v1497_v3 }
 0x465   : > { %1801 = vmatprep.mubr.bf16.mxu1 %v1503_v8  ;;  %1842 = vmatprep.mubr.bf16.mxu0 %v1505_v9 }
 0x466   : > { %1802 = vmatmul.mubr.bf16.vlgmr.msra.gmra.mrb[8].mxu1 %v1502_v6  ;;  %1843 = vmatmul.mubr.bf16.vlgmr.msra.gmra.mrb[20].mxu0 %v1504_v7 }
 0x539   : > { %v2083_v10 = vpop.f32.mrb[8].mxu1  ;;  %v2105_v11 = vpop.f32.mrb[20].mxu0 }
 0x53a   : > { %v2084_v13 = vpop.f32.mrb[9].mxu1  ;;  %v2106_v14 = vpop.f32.mrb[21].mxu0 }
 0x53b   : > { %v2085_v15 = vadd.f32 %v2084_v13, %v2083_v10  ;;  %v2107_v16 = vadd.f32 %v2106_v14, %v2105_v11  ;;  %v2086_v17 = vpop.f32.mrb[10].mxu1  ;;  %v2108_v18 = vpop.f32.mrb[22].mxu0 }
 0x53c   : > { %v2087_v19 = vpop.f32.mrb[11].mxu1  ;;  %v2109_v20 = vpop.f32.mrb[23].mxu0 }
 0x53d   : > { %v1804_v21 = vadd.f32 %v2085_v15, %v2009_v12  ;;  %v2088_v22 = vadd.f32 %v2087_v19, %v2086_v17  ;;  %v2110_v23 = vadd.f32 %v2109_v20, %v2108_v18 }
 0x53f   : > { %v1845_v24 = vadd.f32 %v2107_v16, %v1804_v21  ;;  %v1807_v26 = vadd.f32 %v2088_v22, %v2009_v12 }
 0x541   : > { %1851 = vst.msk [vmem:[%s496_s20] sm:$0xff] %vm545_vm1, %v1845_v24  ;;  %v1848_v27 = vadd.f32 %v2110_v23, %v1807_v26 }
 0x543   : > { %1852 = vst.msk [vmem:[%s496_s20 + $0x8] sm:$0xff] %vm545_vm1, %v1848_v27 }
 0x544 PF: > { %s25_s18 = sadd.s32 1, %s2339_s18  }
 0x545   : > { %p22_p4 = scmp.ge.s32.totalorder %s25_s18, 4  }
 0x547   :  { %24 = sbr.rel (!%p22_p4) target bundleno = 1 (0x1), region = 110 }

</bundles_post_ra>
